<compile_context>
chip_gen: v7x
topology: tpu7x:2x2x1
jax: 0.10.0
libtpu: 0.0.40
codegen_flags: <defaults>
</compile_context>

<pallas_src>
import functools

import jax
import jax.numpy as jnp
from jax.experimental import pallas as pl
from jax.experimental.pallas import tpu as pltpu

LANE = 128            # vreg lane width (last dim)
SUBLANE = 8           # vreg sublane width for f32 (2nd-to-last dim)
MAX_BATCH_TILE = 1024  # gains from larger tiles flatten past ~1024 rows


def _round_up(n, m):
    return ((n + m - 1) // m) * m


def _cdiv(a, b):
    return (a + b - 1) // b


def _fused_mlp_kernel(*refs, num_layers, in_dim, pad_input):
    """Fused MLP: Linear(+tanh) for all layers, last layer linear only.

    refs = (x_ref, w0, b0, ..., w{L-1}, b{L-1}, o_ref[, xpad_ref])
      x_ref : (TB, in_dim)          VMEM batch tile (true, unpadded last dim)
      wl    : (Pl, Pl+1)            VMEM, pre-transposed (in, out), lane-padded
      bl    : (1,  Pl+1)            VMEM
      o_ref : (TB, out_dim)         VMEM (true, unpadded last dim)
      xpad  : (TB, P0)  scratch     only when in_dim needs lane padding
    Intermediate activations never leave VMEM.
    """
    x_ref = refs[0]
    o_ref = refs[1 + 2 * num_layers]

    if pad_input:
        xpad_ref = refs[2 + 2 * num_layers]
        # Zero every iteration (cheap VMEM-local store); a once-only init is
        # unsafe under megacore sharding where a core may never see step 0.
        xpad_ref[...] = jnp.zeros_like(xpad_ref)
        xpad_ref[:, :in_dim] = x_ref[...]
        h = xpad_ref[...]
    else:
        h = x_ref[...]

    for l in range(num_layers):
        w = refs[1 + 2 * l][...]
        b = refs[2 + 2 * l][...]
        h = jnp.dot(h, w, preferred_element_type=jnp.float32) + b
        if l < num_layers - 1:
            h = jnp.tanh(h)   # EUP slot; keep f32 (portable to v5e)

    # Store only the true output columns (masked vst beats 64x HBM writes).
    o_ref[...] = h[:, :o_ref.shape[1]].astype(o_ref.dtype)


def net_uniform_forward(padded_params, dims, x):
    """Forward pass matching Net_uniform.

    padded_params: list of (w_p (pd_in, pd_out), b_p (1, pd_out)), lane-padded
                   once at init.  dims: true layer sizes [in, h1, ..., out].
    """
    assert x.dtype == jnp.float32, "SUBLANE=8 tiling assumes f32 inputs"
    L = len(padded_params)
    B, in_dim = x.shape
    assert in_dim == dims[0]
    out_dim = dims[-1]
    pd0 = padded_params[0][0].shape[0]

    # Divisor-aware batch tiling: tile count from B, rounded to an even count
    # when >1 so v7x's two TensorCores get balanced work; TB sublane-aligned.
    num_tiles = _cdiv(B, MAX_BATCH_TILE)
    if num_tiles > 1:
        num_tiles = _round_up(num_tiles, 2)
    TB = _round_up(_cdiv(B, num_tiles), SUBLANE)
    B_pad = num_tiles * TB

    if B_pad != B:
        x = jnp.pad(x, ((0, B_pad - B), (0, 0)))   # row pad only, <=TB-1 rows

    pad_input = (pd0 != in_dim)

    inputs = [x]
    in_specs = [pl.BlockSpec((TB, in_dim), lambda i: (i, 0))]
    for (w_p, b_p) in padded_params:
        inputs += [w_p, b_p]
        # Constant index_map -> weights/biases stay VMEM-resident across tiles.
        in_specs += [
            pl.BlockSpec(w_p.shape, lambda i: (0, 0)),
            pl.BlockSpec(b_p.shape, lambda i: (0, 0)),
        ]

    scratch_shapes = []
    if pad_input:
        scratch_shapes.append(pltpu.VMEM((TB, pd0), jnp.float32))

    kernel = functools.partial(_fused_mlp_kernel, num_layers=L,
                               in_dim=in_dim, pad_input=pad_input)
    out = pl.pallas_call(
        kernel,
        out_shape=jax.ShapeDtypeStruct((B_pad, out_dim), x.dtype),
        grid=(num_tiles,),
        in_specs=in_specs,
        out_specs=pl.BlockSpec((TB, out_dim), lambda i: (i, 0)),
        scratch_shapes=scratch_shapes,
        compiler_params=pltpu.CompilerParams(
            dimension_semantics=("parallel",),   # shard batch across TCs (v7x)
            vmem_limit_bytes=32 * 1024 * 1024,   # explicit headroom, v7x-safe
        ),
    )(*inputs)
    return out[:B] if B_pad != B else out


def init_net_uniform(layers, key):
    """Mirror the PyTorch module: weight ~ U(0, 1); bias keeps PyTorch's
    default Linear init U(-1/sqrt(in), 1/sqrt(in)).  Weights are stored
    pre-transposed as (in, out) and zero-padded to 128-lane multiples HERE,
    once, so the forward pass issues no per-call pad ops."""
    dims = list(layers)
    pdims = [_round_up(d, LANE) for d in dims]
    padded_params = []
    for l, (in_size, out_size) in enumerate(zip(layers, layers[1:])):
        key, kw, kb = jax.random.split(key, 3)
        w_t = jax.random.uniform(kw, (in_size, out_size), dtype=jnp.float32,
                                 minval=0.0, maxval=1.0)
        bound = 1.0 / (in_size ** 0.5)
        b = jax.random.uniform(kb, (1, out_size), dtype=jnp.float32,
                               minval=-bound, maxval=bound)
        # Zero padding is exact: padded rows/cols stay 0 through dot+bias+tanh.
        w_p = jnp.pad(w_t, ((0, pdims[l] - in_size),
                            (0, pdims[l + 1] - out_size)))
        b_p = jnp.pad(b, ((0, 0), (0, pdims[l + 1] - out_size)))
        padded_params.append((w_p, b_p))
    return padded_params, dims


def _reference_forward(padded_params, dims, x):
    L = len(padded_params)
    h = x
    for l, (w_p, b_p) in enumerate(padded_params):
        w = w_p[:dims[l], :dims[l + 1]]
        b = b_p[:, :dims[l + 1]]
        h = h @ w + b
        if l < L - 1:
            h = jnp.tanh(h)
    return h


if __name__ == "__main__":
    # Small shapes consistent with the module: an MLP [4 -> 32 -> 32 -> 2].
    Layers = [4, 32, 32, 2]
    batch = 2

    key = jax.random.PRNGKey(0)
    key, kx = jax.random.split(key)
    x = jax.random.normal(kx, (batch, Layers[0]), dtype=jnp.float32)

    padded_params, dims = init_net_uniform(Layers, key)

    yhat = jax.block_until_ready(net_uniform_forward(padded_params, dims, x))
    ref = _reference_forward(padded_params, dims, x)
    assert yhat.shape == (batch, Layers[-1])
    assert jnp.allclose(yhat, ref, atol=1e-5, rtol=1e-5)

    # Secondary check: multi-tile path. B=1152 -> grid=(2,), TB=576 (no dead rows).
    key, kx2 = jax.random.split(key)
    x_big = jax.random.normal(kx2, (1152, Layers[0]), dtype=jnp.float32)
    y_big = jax.block_until_ready(net_uniform_forward(padded_params, dims, x_big))
    ref_big = _reference_forward(padded_params, dims, x_big)
    assert y_big.shape == (1152, Layers[-1])
    assert jnp.allclose(y_big, ref_big, atol=1e-5, rtol=1e-5)

    print("KERNEL_OK")
</pallas_src>

<mosaic_0001>
module attributes {stable_mosaic.version = 11 : i64} {
  func.func @_fused_mlp_kernel(%arg0: i32, %arg1: memref<8x4xf32, #tpu.memory_space<vmem>>, %arg2: memref<128x128xf32, #tpu.memory_space<vmem>>, %arg3: memref<1x128xf32, #tpu.memory_space<vmem>>, %arg4: memref<128x128xf32, #tpu.memory_space<vmem>>, %arg5: memref<1x128xf32, #tpu.memory_space<vmem>>, %arg6: memref<128x128xf32, #tpu.memory_space<vmem>>, %arg7: memref<1x128xf32, #tpu.memory_space<vmem>>, %arg8: memref<8x2xf32, #tpu.memory_space<vmem>>, %arg9: memref<8x128xf32, #tpu.memory_space<vmem>>) attributes {dimension_semantics = [#tpu.dimension_semantics<parallel>], iteration_bounds = array<i64: 1>, scalar_prefetch = 0 : i64, scratch_operands = 1 : i64, tpu.core_type = #tpu.core_type<tc>, window_params = [{transform_indices = @transform_0, window_bounds = array<i64: 8, 4>}, {pipeline_mode = #tpu.pipeline_mode<synchronous>, transform_indices = @transform_1, window_bounds = array<i64: 128, 128>}, {pipeline_mode = #tpu.pipeline_mode<synchronous>, transform_indices = @transform_2, window_bounds = array<i64: 1, 128>}, {pipeline_mode = #tpu.pipeline_mode<synchronous>, transform_indices = @transform_3, window_bounds = array<i64: 128, 128>}, {pipeline_mode = #tpu.pipeline_mode<synchronous>, transform_indices = @transform_4, window_bounds = array<i64: 1, 128>}, {pipeline_mode = #tpu.pipeline_mode<synchronous>, transform_indices = @transform_5, window_bounds = array<i64: 128, 128>}, {pipeline_mode = #tpu.pipeline_mode<synchronous>, transform_indices = @transform_6, window_bounds = array<i64: 1, 128>}, {transform_indices = @transform_7, window_bounds = array<i64: 8, 2>}]} {
    %cst = arith.constant 0.000000e+00 : f32
    %0 = vector.broadcast %cst : f32 to vector<8x128xf32>
    %c0 = arith.constant 0 : index
    %c0_0 = arith.constant 0 : index
    %1 = vector.load %arg9[%c0, %c0_0] : memref<8x128xf32, #tpu.memory_space<vmem>>, vector<8x128xf32>
    tpu.vector_store %arg9[%c0, %c0_0], %0 {strides = array<i32>} : memref<8x128xf32, #tpu.memory_space<vmem>>, vector<8x128xf32>,
    %c0_1 = arith.constant 0 : index
    %c0_2 = arith.constant 0 : index
    %2 = vector.load %arg1[%c0_1, %c0_2] : memref<8x4xf32, #tpu.memory_space<vmem>>, vector<8x4xf32>
    %c0_3 = arith.constant 0 : index
    %c0_4 = arith.constant 0 : index
    %3 = vector.load %arg9[%c0_3, %c0_4] : memref<8x128xf32, #tpu.memory_space<vmem>>, vector<8x4xf32>
    tpu.vector_store %arg9[%c0_3, %c0_4], %2 {strides = array<i32>} : memref<8x128xf32, #tpu.memory_space<vmem>>, vector<8x4xf32>,
    %c0_5 = arith.constant 0 : index
    %c0_6 = arith.constant 0 : index
    %4 = vector.load %arg9[%c0_5, %c0_6] : memref<8x128xf32, #tpu.memory_space<vmem>>, vector<8x128xf32>
    %c0_7 = arith.constant 0 : index
    %c0_8 = arith.constant 0 : index
    %5 = vector.load %arg2[%c0_7, %c0_8] : memref<128x128xf32, #tpu.memory_space<vmem>>, vector<128x128xf32>
    %c0_9 = arith.constant 0 : index
    %c0_10 = arith.constant 0 : index
    %6 = vector.load %arg3[%c0_9, %c0_10] : memref<1x128xf32, #tpu.memory_space<vmem>>, vector<1x128xf32>
    %cst_11 = arith.constant dense<0.000000e+00> : vector<8x128xf32>
    %7 = tpu.matmul %4, %5, %cst_11 {dimension_numbers = #tpu.dot_dimension_numbers<[1], [0], [0], [1], [0, 0, 1, 1], [], []>} : vector<8x128xf32>, vector<128x128xf32>, vector<8x128xf32> -> vector<8x128xf32>
    %8 = vector.broadcast %6 : vector<1x128xf32> to vector<8x128xf32>
    %9 = arith.addf %7, %8 : vector<8x128xf32>
    %10 = math.tanh %9 : vector<8x128xf32>
    %c0_12 = arith.constant 0 : index
    %c0_13 = arith.constant 0 : index
    %11 = vector.load %arg4[%c0_12, %c0_13] : memref<128x128xf32, #tpu.memory_space<vmem>>, vector<128x128xf32>
    %c0_14 = arith.constant 0 : index
    %c0_15 = arith.constant 0 : index
    %12 = vector.load %arg5[%c0_14, %c0_15] : memref<1x128xf32, #tpu.memory_space<vmem>>, vector<1x128xf32>
    %cst_16 = arith.constant dense<0.000000e+00> : vector<8x128xf32>
    %13 = tpu.matmul %10, %11, %cst_16 {dimension_numbers = #tpu.dot_dimension_numbers<[1], [0], [0], [1], [0, 0, 1, 1], [], []>} : vector<8x128xf32>, vector<128x128xf32>, vector<8x128xf32> -> vector<8x128xf32>
    %14 = vector.broadcast %12 : vector<1x128xf32> to vector<8x128xf32>
    %15 = arith.addf %13, %14 : vector<8x128xf32>
    %16 = math.tanh %15 : vector<8x128xf32>
    %c0_17 = arith.constant 0 : index
    %c0_18 = arith.constant 0 : index
    %17 = vector.load %arg6[%c0_17, %c0_18] : memref<128x128xf32, #tpu.memory_space<vmem>>, vector<128x128xf32>
    %c0_19 = arith.constant 0 : index
    %c0_20 = arith.constant 0 : index
    %18 = vector.load %arg7[%c0_19, %c0_20] : memref<1x128xf32, #tpu.memory_space<vmem>>, vector<1x128xf32>
    %cst_21 = arith.constant dense<0.000000e+00> : vector<8x128xf32>
    %19 = tpu.matmul %16, %17, %cst_21 {dimension_numbers = #tpu.dot_dimension_numbers<[1], [0], [0], [1], [0, 0, 1, 1], [], []>} : vector<8x128xf32>, vector<128x128xf32>, vector<8x128xf32> -> vector<8x128xf32>
    %20 = vector.broadcast %18 : vector<1x128xf32> to vector<8x128xf32>
    %21 = arith.addf %19, %20 : vector<8x128xf32>
    %22 = vector.extract_strided_slice %21 {offsets = [0, 0], sizes = [8, 2], strides = [1, 1]} : vector<8x128xf32> to vector<8x2xf32>
    %c0_22 = arith.constant 0 : index
    %c0_23 = arith.constant 0 : index
    %23 = vector.load %arg8[%c0_22, %c0_23] : memref<8x2xf32, #tpu.memory_space<vmem>>, vector<8x2xf32>
    tpu.vector_store %arg8[%c0_22, %c0_23], %22 {strides = array<i32>} : memref<8x2xf32, #tpu.memory_space<vmem>>, vector<8x2xf32>,
    return
  }
  func.func @transform_0(%arg0: i32) -> (i32, i32) {
    %c0_i32 = arith.constant 0 : i32
    %c0_i32_0 = arith.constant 0 : i32
    return %arg0, %c0_i32 : i32, i32
  }
  func.func @transform_1(%arg0: i32) -> (i32, i32) {
    %c0_i32 = arith.constant 0 : i32
    %c0_i32_0 = arith.constant 0 : i32
    %c0_i32_1 = arith.constant 0 : i32
    return %c0_i32, %c0_i32_0 : i32, i32
  }
  func.func @transform_2(%arg0: i32) -> (i32, i32) {
    %c0_i32 = arith.constant 0 : i32
    %c0_i32_0 = arith.constant 0 : i32
    %c0_i32_1 = arith.constant 0 : i32
    return %c0_i32, %c0_i32_0 : i32, i32
  }
  func.func @transform_3(%arg0: i32) -> (i32, i32) {
    %c0_i32 = arith.constant 0 : i32
    %c0_i32_0 = arith.constant 0 : i32
    %c0_i32_1 = arith.constant 0 : i32
    return %c0_i32, %c0_i32_0 : i32, i32
  }
  func.func @transform_4(%arg0: i32) -> (i32, i32) {
    %c0_i32 = arith.constant 0 : i32
    %c0_i32_0 = arith.constant 0 : i32
    %c0_i32_1 = arith.constant 0 : i32
    return %c0_i32, %c0_i32_0 : i32, i32
  }
  func.func @transform_5(%arg0: i32) -> (i32, i32) {
    %c0_i32 = arith.constant 0 : i32
    %c0_i32_0 = arith.constant 0 : i32
    %c0_i32_1 = arith.constant 0 : i32
    return %c0_i32, %c0_i32_0 : i32, i32
  }
  func.func @transform_6(%arg0: i32) -> (i32, i32) {
    %c0_i32 = arith.constant 0 : i32
    %c0_i32_0 = arith.constant 0 : i32
    %c0_i32_1 = arith.constant 0 : i32
    return %c0_i32, %c0_i32_0 : i32, i32
  }
  func.func @transform_7(%arg0: i32) -> (i32, i32) {
    %c0_i32 = arith.constant 0 : i32
    %c0_i32_0 = arith.constant 0 : i32
    return %arg0, %c0_i32 : i32, i32
  }
}

</mosaic_0001>

<bundles_post_ra>
// kernel: tpu_custom_call.1
= control target key start
LH: loop header
LB: loop body
LE: loop exit
PB: predicated region body
PF: predicated region fallthrough
CT: control target
= control target key end

     0   :  { %12 = vsyncpa [#allocation4], 0  ;;  %s820_s0 = inlined_call_operand.vmem [shape: f32[8,4], index: 0, kind: input, shape index: {}]   ;;  %s821_s1 = inlined_call_operand.hbm [shape: f32[128,128], index: 1, kind: input, shape index: {}]   ;;  %s822_s2 = inlined_call_operand.vmem [shape: f32[1,128], index: 2, kind: input, shape index: {}]   ;;  %s823_s3 = inlined_call_operand.hbm [shape: f32[128,128], index: 3, kind: input, shape index: {}]   ;;  %s824_s4 = inlined_call_operand.vmem [shape: f32[1,128], index: 4, kind: input, shape index: {}]   ;;  %s825_s5 = inlined_call_operand.hbm [shape: f32[128,128], index: 5, kind: input, shape index: {}]   ;;  %s826_s6 = inlined_call_operand.vmem [shape: f32[1,128], index: 6, kind: input, shape index: {}]   ;;  %s827_s7 = inlined_call_operand.vmem [shape: f32[8,2], index: 7, kind: output, shape index: {}]  }
   0x1   :  { %13 = vsyncpa [#allocation6], 0  ;;  %s674_s24 = smov [#allocation5]   ;;  %s675_s26 = smov [#allocation3]  }
   0x2   :  { %s35_s25 = sshll.u32 %s674_s24, 4  ;;  %s21_s27 = sshll.u32 %s675_s26, 4  ;;  %s36_s25 = int_to_ptr.vmem [resolvable:$true] %s35_s25  ;;  %s722_s27 = int_to_ptr.vmem [resolvable:$true] %s21_s27 }
   0x3   :  { %s604_s30 = scalar_lea.hbm %s823_s3, 2048 }
   0x4   :  { %p605_p0 = scmp.ne.s32.totalorder %s823_s3, %s604_s30  ;;  %p608_p1 = scmp.lt.u32.totalorder %s604_s30, %s823_s3 }
   0x6   :  { %p610_p2 = pnand %p608_p1, %p605_p0 }
   0x8   :  { %613 = shalt.err (!%p610_p2)
}
   0x9   :  { %s614_s12 = scalar_lea.vmem %s36_s25, 2048  ;;  %p619_p4 = scmp.lt.s32.totalorder %s36_s25, %s36_s25 }
   0xa   :  { %p615_p3 = scmp.ne.s32.totalorder %s36_s25, %s614_s12  ;;  %p620_p5 = scmp.lt.s32.totalorder %s614_s12, %s614_s12 }
   0xc   :  { %p621_p6 = por %p620_p5, %p619_p4 }
   0xe   :  { %p622_p7 = pnand %p621_p6, %p615_p3 }
  0x10   :  { %625 = shalt.err (!%p622_p7)
}
  0x11   :  { %s676_s13 = smov 128   ;;  %s677_s14 = smov 8  }
  0x12   :  { %41 = dma.hbm_to_vmem [thread:$0]  %s823_s3, 2048, %s36_s25, [#allocation6], %s676_s13, %s676_s13, %s677_s14  }
  0x13   :  { %s626_s19 = scalar_lea.hbm %s821_s1, 2048 }
  0x14   :  { %p627_p8 = scmp.ne.s32.totalorder %s821_s1, %s626_s19  ;;  %p630_p9 = scmp.lt.u32.totalorder %s626_s19, %s821_s1 }
  0x16   :  { %p632_p10 = pnand %p630_p9, %p627_p8 }
  0x18   :  { %635 = shalt.err (!%p632_p10)
}
  0x19   :  { %s636_s24 = scalar_lea.vmem %s722_s27, 2048  ;;  %p641_p12 = scmp.lt.s32.totalorder %s722_s27, %s722_s27 }
  0x1a   :  { %p637_p11 = scmp.ne.s32.totalorder %s722_s27, %s636_s24  ;;  %p642_p13 = scmp.lt.s32.totalorder %s636_s24, %s636_s24 }
  0x1c   :  { %p643_p0 = por %p642_p13, %p641_p12 }
  0x1e   :  { %p644_p1 = pnand %p643_p0, %p637_p11 }
  0x20   :  { %647 = shalt.err (!%p644_p1)
}
  0x21   :  { %27 = dma.hbm_to_vmem [thread:$0]  %s821_s1, 2048, %s722_s27, [#allocation4], %s676_s13, %s676_s13, %s677_s14  }
  0x22   :  { %s678_s26 = smov [#allocation7]   ;;  %s648_s8 = scalar_lea.hbm %s825_s5, 2048 }
  0x23   :  { %s49_s28 = sshll.u32 %s678_s26, 4  ;;  %p649_p2 = scmp.ne.s32.totalorder %s825_s5, %s648_s8  ;;  %s50_s28 = int_to_ptr.vmem [resolvable:$true] %s49_s28 }
  0x24   :  { %p652_p3 = scmp.lt.u32.totalorder %s648_s8, %s825_s5 }
  0x26   :  { %p654_p4 = pnand %p652_p3, %p649_p2 }
  0x28   :  { %657 = shalt.err (!%p654_p4)
}
  0x29   :  { %s658_s15 = scalar_lea.vmem %s50_s28, 2048  ;;  %p663_p6 = scmp.lt.s32.totalorder %s50_s28, %s50_s28 }
  0x2a   :  { %p659_p5 = scmp.ne.s32.totalorder %s50_s28, %s658_s15  ;;  %p664_p7 = scmp.lt.s32.totalorder %s658_s15, %s658_s15 }
  0x2c   :  { %p665_p8 = por %p664_p7, %p663_p6 }
  0x2e   :  { %p666_p9 = pnand %p665_p8, %p659_p5 }
  0x30   :  { %669 = shalt.err (!%p666_p9)
}
  0x31   :  { %55 = dma.hbm_to_vmem [thread:$0]  %s825_s5, 2048, %s50_s28, [#allocation6], %s676_s13, %s676_s13, %s677_s14  }
  0x32   :  { %670 = dma.done.wait [#allocation4], 2048  }
  0x33   :  { %671 = vsyncadd [#allocation4], 4294965248 }
  0x34   :  { %672 = dma.done.wait [#allocation6], 4096  }
  0x35   :  { %673 = vsyncadd [#allocation6], 4294963200  ;;  %v679_v0 = vmov 0.0|0.0   ;;  %v680_v1 = vmov 0.0   ;;  %vm681_vm0 = vmmov 0   ;;  %v72_v2 = vld [vmem:[#allocation3] sm:$0xff] }
  0x36   :  { %520 = vmatprep.subr.bf16.mxu0 %v679_v0  ;;  %67 = vst [vmem:[#allocation2] sm:$0xff] %v680_v1  ;;  %447 = vmatprep.mubr.msk.f32.mxu0 %vm681_vm0, %v680_v1  ;;  %v73_v3 = vld [vmem:[#allocation3 + $0x8] sm:$0xff]  ;;  %v74_v4 = vld [vmem:[#allocation3 + $0x10] sm:$0xff]  ;;  %v75_v6 = vld [vmem:[#allocation3 + $0x18] sm:$0xff]  ;;  %vm69_vm1 = vcmask 31744   ;;  %vm353_vm2 = vcmask 15360  }
  0x37   :  { %544 = vmatprep.subr.bf16.mxu1 %v679_v0  ;;  %482 = vmatprep.mubr.msk.f32.mxu1 %vm681_vm0, %v680_v1  ;;  %v521_v5 = vpack.c.bf16 %v73_v3, %v72_v2  ;;  %v524_v7 = vpack.c.bf16 %v75_v6, %v74_v4  ;;  %v76_v8 = vld [vmem:[#allocation3 + $0x20] sm:$0xff]  ;;  %v77_v9 = vld [vmem:[#allocation3 + $0x28] sm:$0xff]  ;;  %v68_v10 = vld [vmem:[%s820_s0] sm:$0xff] }
  0x38   :  { %v166_v11 = vld [vmem:[#allocation5] sm:$0xff]  ;;  %70 = vst.msk [vmem:[#allocation2] sm:$0xff] %vm69_vm1, %v68_v10  ;;  %v167_v12 = vld [vmem:[#allocation5 + $0x8] sm:$0xff]  ;;  %v168_v13 = vld [vmem:[#allocation5 + $0x10] sm:$0xff]  ;;  %v527_v15 = vpack.c.bf16 %v77_v9, %v76_v8 }
  0x39   :  { %522 = vmatpush3.bf16.msra.mxu0 %v521_v5  ;;  %v169_v14 = vld [vmem:[#allocation5 + $0x18] sm:$0xff]  ;;  %v545_v16 = vpack.c.bf16 %v167_v12, %v166_v11  ;;  %v78_v17 = vld [vmem:[#allocation3 + $0x30] sm:$0xff]  ;;  %v170_v20 = vld [vmem:[#allocation5 + $0x20] sm:$0xff] }
  0x3a   :  { %523 = vmatprep.subr.bf16.mxu0 %v679_v0  ;;  %v79_v18 = vld [vmem:[#allocation3 + $0x38] sm:$0xff]  ;;  %v548_v19 = vpack.c.bf16 %v169_v14, %v168_v13  ;;  %v171_v21 = vld [vmem:[#allocation5 + $0x28] sm:$0xff]  ;;  %v80_v23 = vld [vmem:[#allocation3 + $0x40] sm:$0xff] }
  0x3b   :  { %546 = vmatpush3.bf16.msra.mxu1 %v545_v16  ;;  %v530_v22 = vpack.c.bf16 %v79_v18, %v78_v17  ;;  %v81_v24 = vld [vmem:[#allocation3 + $0x48] sm:$0xff]  ;;  %v551_v25 = vpack.c.bf16 %v171_v21, %v170_v20  ;;  %v172_v26 = vld [vmem:[#allocation5 + $0x30] sm:$0xff]  ;;  %v173_v27 = vld [vmem:[#allocation5 + $0x38] sm:$0xff] }
  0x3c   :  { %547 = vmatprep.subr.bf16.mxu1 %v679_v0  ;;  %v533_v28 = vpack.c.bf16 %v81_v24, %v80_v23  ;;  %v82_v29 = vld [vmem:[#allocation3 + $0x50] sm:$0xff]  ;;  %v83_v30 = vld [vmem:[#allocation3 + $0x58] sm:$0xff]  ;;  %v554_v31 = vpack.c.bf16 %v173_v27, %v172_v26  ;;  %v174_v32 = vld [vmem:[#allocation5 + $0x40] sm:$0xff] }
  0x3d   :  { %525 = vmatpush3.bf16.msra.mxu0 %v524_v7  ;;  %v175_v33 = vld [vmem:[#allocation5 + $0x48] sm:$0xff]  ;;  %v536_v34 = vpack.c.bf16 %v83_v30, %v82_v29  ;;  %v84_v35 = vld [vmem:[#allocation3 + $0x60] sm:$0xff]  ;;  %v86_v39 = vld [vmem:[#allocation3 + $0x70] sm:$0xff] }
  0x3e   :  { %526 = vmatprep.subr.bf16.mxu0 %v679_v0  ;;  %v85_v36 = vld [vmem:[#allocation3 + $0x68] sm:$0xff]  ;;  %v557_v37 = vpack.c.bf16 %v175_v33, %v174_v32  ;;  %v87_v40 = vld [vmem:[#allocation3 + $0x78] sm:$0xff]  ;;  %v176_v43 = vld [vmem:[#allocation5 + $0x50] sm:$0xff] }
  0x3f   :  { %549 = vmatpush3.bf16.msra.mxu1 %v548_v19  ;;  %v539_v38 = vpack.c.bf16 %v85_v36, %v84_v35  ;;  %v542_v41 = vpack.c.bf16 %v87_v40, %v86_v39  ;;  %v71_v42 = vld [vmem:[#allocation2] sm:$0xff]  ;;  %v178_v46 = vld [vmem:[#allocation5 + $0x60] sm:$0xff]  ;;  %v179_v47 = vld [vmem:[#allocation5 + $0x68] sm:$0xff] }
  0x40   :  { %550 = vmatprep.subr.bf16.mxu1 %v679_v0  ;;  %v177_v44 = vld [vmem:[#allocation5 + $0x58] sm:$0xff]  ;;  %v563_v48 = vpack.c.bf16 %v179_v47, %v178_v46  ;;  %v180_v49 = vld [vmem:[#allocation5 + $0x70] sm:$0xff]  ;;  %v260_v52 = vld [vmem:[#allocation7] sm:$0xff] }
  0x41   :  { %528 = vmatpush3.bf16.msra.mxu0 %v527_v15  ;;  %v560_v45 = vpack.c.bf16 %v177_v44, %v176_v43  ;;  %v181_v50 = vld [vmem:[#allocation5 + $0x78] sm:$0xff]  ;;  %v261_v53 = vld [vmem:[#allocation7 + $0x8] sm:$0xff]  ;;  %v262_v54 = vld [vmem:[#allocation7 + $0x10] sm:$0xff] }
  0x42   :  { %529 = vmatprep.subr.bf16.mxu0 %v679_v0  ;;  %v566_v51 = vpack.c.bf16 %v181_v50, %v180_v49  ;;  %v569_v55 = vpack.c.bf16 %v261_v53, %v260_v52  ;;  %v263_v56 = vld [vmem:[#allocation7 + $0x18] sm:$0xff]  ;;  %v264_v58 = vld [vmem:[#allocation7 + $0x20] sm:$0xff]  ;;  %v265_v59 = vld [vmem:[#allocation7 + $0x28] sm:$0xff] }
  0x43   :  { %552 = vmatpush3.bf16.msra.mxu1 %v551_v25  ;;  %v572_v57 = vpack.c.bf16 %v263_v56, %v262_v54  ;;  %v575_v60 = vpack.c.bf16 %v265_v59, %v264_v58  ;;  %v266_v61 = vld [vmem:[#allocation7 + $0x30] sm:$0xff]  ;;  %v267_v62 = vld [vmem:[#allocation7 + $0x38] sm:$0xff]  ;;  %v269_v2 = vld [vmem:[#allocation7 + $0x48] sm:$0xff] }
  0x44   :  { %553 = vmatprep.subr.bf16.mxu1 %v679_v0  ;;  %v578_v63 = vpack.c.bf16 %v267_v62, %v266_v61  ;;  %v361_v4 = vld [vmem:[%s822_s2] ss:$0 sm:$0xff]  ;;  %v270_v9 = vld [vmem:[#allocation7 + $0x50] sm:$0xff]  ;;  %v272_v12 = vld [vmem:[#allocation7 + $0x60] sm:$0xff] }
  0x45   :  { %531 = vmatpush3.bf16.msra.mxu0 %v530_v22  ;;  %v271_v10 = vld [vmem:[#allocation7 + $0x58] sm:$0xff]  ;;  %v273_v13 = vld [vmem:[#allocation7 + $0x68] sm:$0xff]  ;;  %v274_v15 = vld [vmem:[#allocation7 + $0x70] sm:$0xff] }
  0x46   :  { %532 = vmatprep.subr.bf16.mxu0 %v679_v0  ;;  %v584_v11 = vpack.c.bf16 %v271_v10, %v270_v9  ;;  %v587_v14 = vpack.c.bf16 %v273_v13, %v272_v12  ;;  %v275_v16 = vld [vmem:[#allocation7 + $0x78] sm:$0xff] }
  0x47   :  { %555 = vmatpush3.bf16.msra.mxu1 %v554_v31  ;;  %v590_v17 = vpack.c.bf16 %v275_v16, %v274_v15  ;;  %v362_v18 = vld [vmem:[%s824_s4] ss:$0 sm:$0xff] }
  0x48   :  { %556 = vmatprep.subr.bf16.mxu1 %v679_v0  ;;  %v363_v23 = vld [vmem:[%s826_s6] ss:$0 sm:$0xff] }
  0x49   :  { %534 = vmatpush3.bf16.msra.mxu0 %v533_v28 }
  0x4a   :  { %535 = vmatprep.subr.bf16.mxu0 %v679_v0 }
  0x4b   :  { %558 = vmatpush3.bf16.msra.mxu1 %v557_v37 }
  0x4c   :  { %559 = vmatprep.subr.bf16.mxu1 %v679_v0 }
  0x4d   :  { %537 = vmatpush3.bf16.msra.mxu0 %v536_v34 }
  0x4e   :  { %538 = vmatprep.subr.bf16.mxu0 %v679_v0 }
  0x4f   :  { %561 = vmatpush3.bf16.msra.mxu1 %v560_v45 }
  0x50   :  { %562 = vmatprep.subr.bf16.mxu1 %v679_v0 }
  0x51   :  { %540 = vmatpush3.bf16.msra.mxu0 %v539_v38 }
  0x52   :  { %541 = vmatprep.subr.bf16.mxu0 %v679_v0 }
  0x53   :  { %564 = vmatpush3.bf16.msra.mxu1 %v563_v48 }
  0x54   :  { %565 = vmatprep.subr.bf16.mxu1 %v679_v0 }
  0x55   :  { %543 = vmatpush3.bf16.msra.mxu0 %v542_v41 }
  0x56   :  { %568 = vmatprep.subr.bf16.mxu0 %v679_v0 }
  0x57   :  { %567 = vmatpush3.bf16.msra.mxu1 %v566_v51 }
  0x58   :  { %448 = vmatmul.mubr.f32.vlgmr.msra.gmra.mrb[0].mxu0 %v71_v42 }
  0x59   :  { %517 = vmatprep.mubr.msk.f32.mxu0 %vm681_vm0, %v680_v1  ;;  %570 = vmatpush3.bf16.msra.mxu0 %v569_v55  ;;  %v268_v1 = vld [vmem:[#allocation7 + $0x40] sm:$0xff] }
  0x5a   :  { %571 = vmatprep.subr.bf16.mxu0 %v679_v0  ;;  %v581_v3 = vpack.c.bf16 %v269_v2, %v268_v1 }
  0x5d   :  { %573 = vmatpush3.bf16.msra.mxu0 %v572_v57 }
  0x5e   :  { %574 = vmatprep.subr.bf16.mxu0 %v679_v0 }
  0x61   :  { %576 = vmatpush3.bf16.msra.mxu0 %v575_v60 }
  0x62   :  { %577 = vmatprep.subr.bf16.mxu0 %v679_v0 }
  0x65   :  { %579 = vmatpush3.bf16.msra.mxu0 %v578_v63 }
  0x66   :  { %580 = vmatprep.subr.bf16.mxu0 %v679_v0 }
  0x69   :  { %582 = vmatpush3.bf16.msra.mxu0 %v581_v3 }
  0x6a   :  { %583 = vmatprep.subr.bf16.mxu0 %v679_v0 }
  0x6d   :  { %585 = vmatpush3.bf16.msra.mxu0 %v584_v11 }
  0x6e   :  { %586 = vmatprep.subr.bf16.mxu0 %v679_v0 }
  0x71   :  { %588 = vmatpush3.bf16.msra.mxu0 %v587_v14 }
  0x72   :  { %589 = vmatprep.subr.bf16.mxu0 %v679_v0 }
  0x75   :  { %591 = vmatpush3.bf16.msra.mxu0 %v590_v17 }
 0x12b   :  { %v161_v5 = vpop.f32.mrb[0].mxu0 }
 0x12c   :  { %v162_v6 = vadd.f32 %v361_v4, %v161_v5  ;;  %v449_v7 = vpop.f32.mrb[1].mxu0 }
 0x12e   :  { %600 = vtanh.f32 %v162_v6 }
 0x138   :  { %v601_v8 = vpop.eup %600 }
 0x139   :  { %483 = vmatmul.mubr.f32.vlgmr.msra.gmra.mrb[0].mxu1 %v601_v8 }
 0x20c   :  { %v255_v19 = vpop.f32.mrb[0].mxu1 }
 0x20d   :  { %v256_v20 = vadd.f32 %v362_v18, %v255_v19  ;;  %v484_v21 = vpop.f32.mrb[1].mxu1 }
 0x20f   :  { %602 = vtanh.f32 %v256_v20 }
 0x219   :  { %v603_v22 = vpop.eup %602 }
 0x21a   :  { %518 = vmatmul.mubr.f32.vlgmr.msra.gmra.mrb[2].mxu0 %v603_v22 }
 0x2ed   :  { %v349_v24 = vpop.f32.mrb[2].mxu0 }
 0x2ee   :  { %v350_v25 = vadd.f32 %v363_v23, %v349_v24  ;;  %v519_v26 = vpop.f32.mrb[3].mxu0 }
 0x2f0   :  { %354 = vst.msk [vmem:[%s827_s7] sm:$0xff] %vm353_vm2, %v350_v25 }
 0x2f1   :  { %359 = vsyncpa [#allocation4], 1 }
 0x2f2   :  { %360 = vsyncpa [#allocation6], 1 }

</bundles_post_ra>
